<compile_context>
chip_gen: v6e
topology: v6e:2x2x1
jax: 0.10.0
libtpu: 0.0.40
codegen_flags: <defaults>
</compile_context>

<pallas_src>
import jax
import jax.numpy as jnp
from jax.experimental import pallas as pl
from jax.experimental.pallas import tpu as pltpu

_LANE = 128


def _round_up(a: int, b: int) -> int:
    return ((a + b - 1) // b) * b


def _vmem_params():
    """(block budget bytes for ~4 pipeline buffers, vmem_limit_bytes)."""
    try:
        cap = int(pltpu.get_tpu_info().vmem_capacity_bytes)
    except Exception:
        cap = 64 * 1024 * 1024  # be conservative if query is unavailable
    if cap >= 128 * 1024 * 1024:            # v5e / v6e: 128 MiB physical VMEM
        return 24 * 1024 * 1024, 64 * 1024 * 1024
    return 12 * 1024 * 1024, 40 * 1024 * 1024   # v7x: 64 MiB physical per TC


# ----------------------------------------------------------------------------
# Single-pass kernel: the whole reduction axis T is resident in one block.
# ----------------------------------------------------------------------------
def _normalize_1pass_kernel(x_ref, o_ref):
    x = x_ref[...].astype(jnp.float32)                     # (T, tile_f)
    maxima = jnp.max(x, axis=0, keepdims=True)             # (1, tile_f)
    minima = jnp.min(x, axis=0, keepdims=True)             # (1, tile_f)
    # Constant-column guard, exactly like the torch.where.
    minima = jnp.where(maxima == minima, maxima - 1.0, minima)
    # Exact reciprocal on the stats row only; tile-wide op is a VPU multiply.
    inv = 1.0 / (maxima - minima)                          # (1, tile_f)
    o_ref[...] = ((x - minima) * inv).astype(o_ref.dtype)


# ----------------------------------------------------------------------------
# Two-pass path (large T): pass 1 reduces min/max over tiled T, pass 2 applies.
# ----------------------------------------------------------------------------
def _make_stats_kernel(T_total: int):
    def kernel(x_ref, stats_ref, max_sc, min_sc):
        t = pl.program_id(1)

        @pl.when(t == 0)
        def _():
            max_sc[...] = jnp.full(max_sc.shape, -jnp.inf, dtype=max_sc.dtype)
            min_sc[...] = jnp.full(min_sc.shape, jnp.inf, dtype=min_sc.dtype)

        x = x_ref[...].astype(jnp.float32)                 # (tile_t, tile_f)
        tile_t = x.shape[0]
        # Mask rows past the real T in the ragged last tile.
        row = jax.lax.broadcasted_iota(jnp.int32, x.shape, 0)
        valid = (t * tile_t + row) < T_total
        max_sc[...] = jnp.maximum(
            max_sc[...],
            jnp.max(jnp.where(valid, x, -jnp.inf), axis=0, keepdims=True))
        min_sc[...] = jnp.minimum(
            min_sc[...],
            jnp.min(jnp.where(valid, x, jnp.inf), axis=0, keepdims=True))

        @pl.when(t == pl.num_programs(1) - 1)
        def _():
            maxima = max_sc[...]
            minima = min_sc[...]
            minima = jnp.where(maxima == minima, maxima - 1.0, minima)
            inv = 1.0 / (maxima - minima)
            stats_ref[0:1, :] = minima
            stats_ref[1:2, :] = inv

    return kernel


def _apply_kernel(x_ref, stats_ref, o_ref):
    x = x_ref[...].astype(jnp.float32)                     # (tile_t, tile_f)
    minima = stats_ref[0:1, :]                             # (1, tile_f) f32
    inv = stats_ref[1:2, :]                                # (1, tile_f) f32
    o_ref[...] = ((x - minima) * inv).astype(o_ref.dtype)


# ----------------------------------------------------------------------------
# Wrappers
# ----------------------------------------------------------------------------
def _normalize_2d(x, two_pass, max_tile_t):
    T, F = x.shape
    itemsize = jnp.dtype(x.dtype).itemsize
    budget, vmem_limit = _vmem_params()
    f_pad128 = _round_up(F, _LANE)

    # Single-pass is feasible iff even a 128-lane full-T block fits the budget
    # (2 in + 2 out pipeline buffers per block).
    single_ok = 4 * T * _LANE * itemsize <= budget
    use_two_pass = (not single_ok) if two_pass is None else bool(two_pass)

    if not use_two_pass:
        # Largest lane-aligned feature tile whose 4 pipeline buffers fit budget.
        tile_f = max(_LANE, (budget // max(1, 4 * T * itemsize)) // _LANE * _LANE)
        tile_f = min(tile_f, f_pad128)
        # Megacore (v7x): split the F axis only if each half block is >= ~1 MiB.
        if tile_f >= f_pad128 and f_pad128 >= 2 * _LANE:
            half = (f_pad128 // 2) // _LANE * _LANE
            if half >= _LANE and T * half * itemsize >= (1 << 20):
                tile_f = half
        n_f = pl.cdiv(F, tile_f)
        if n_f == 1:
            tile_f = F   # exact full-extent block: no overhang, no masked lanes

        cost = pl.CostEstimate(
            flops=5 * T * F,
            transcendentals=0,
            bytes_accessed=2 * T * F * itemsize,
        )
        return pl.pallas_call(
            _normalize_1pass_kernel,
            out_shape=jax.ShapeDtypeStruct((T, F), x.dtype),
            grid_spec=pltpu.PrefetchScalarGridSpec(
                num_scalar_prefetch=0,
                grid=(n_f,),
                in_specs=[pl.BlockSpec((T, tile_f), lambda j: (0, j))],
                out_specs=pl.BlockSpec((T, tile_f), lambda j: (0, j)),
            ),
            compiler_params=pltpu.CompilerParams(
                dimension_semantics=("parallel",),
                vmem_limit_bytes=vmem_limit,
            ),
            cost_estimate=cost,
        )(x)

    # ---- Two-pass path: VMEM bounded independent of T ----
    tile_t = T if T <= max_tile_t else _round_up(max_tile_t, 8)
    tile_f = max(_LANE, (budget // max(1, 4 * tile_t * itemsize)) // _LANE * _LANE)
    tile_f = min(tile_f, f_pad128)
    n_f = pl.cdiv(F, tile_f)
    if n_f == 1:
        tile_f = F
    n_t = pl.cdiv(T, tile_t)

    stats = pl.pallas_call(
        _make_stats_kernel(T),
        out_shape=jax.ShapeDtypeStruct((2, F), jnp.float32),
        grid_spec=pltpu.PrefetchScalarGridSpec(
            num_scalar_prefetch=0,
            grid=(n_f, n_t),
            in_specs=[pl.BlockSpec((tile_t, tile_f), lambda j, t: (t, j))],
            out_specs=pl.BlockSpec((2, tile_f), lambda j, t: (0, j)),
            scratch_shapes=[pltpu.VMEM((1, tile_f), jnp.float32),
                            pltpu.VMEM((1, tile_f), jnp.float32)],
        ),
        compiler_params=pltpu.CompilerParams(
            dimension_semantics=("parallel", "arbitrary"),
            vmem_limit_bytes=vmem_limit,
        ),
    )(x)

    return pl.pallas_call(
        _apply_kernel,
        out_shape=jax.ShapeDtypeStruct((T, F), x.dtype),
        grid_spec=pltpu.PrefetchScalarGridSpec(
            num_scalar_prefetch=0,
            grid=(n_f, n_t),
            in_specs=[pl.BlockSpec((tile_t, tile_f), lambda j, t: (t, j)),
                      pl.BlockSpec((2, tile_f), lambda j, t: (0, j))],
            out_specs=pl.BlockSpec((tile_t, tile_f), lambda j, t: (t, j)),
        ),
        compiler_params=pltpu.CompilerParams(
            dimension_semantics=("parallel", "parallel"),
            vmem_limit_bytes=vmem_limit,
        ),
    )(x, stats)


def regression_normalized(x: jax.Array, *, two_pass=None, _max_tile_t: int = 256):
    """Column-wise (dim 0) min-max normalization, matching RegressionNormalized.

    x: (T, ...) float array. Trailing dims are flattened into the feature axis
    (same semantics as torch's dim-0 reduce + broadcast). Returns same shape/dtype.
    """
    orig_shape = x.shape
    x2d = x if x.ndim == 2 else x.reshape(x.shape[0], -1)
    out = _normalize_2d(x2d, two_pass, _max_tile_t)
    return out if x.ndim == 2 else out.reshape(orig_shape)


def _reference(x):
    maxima = jnp.max(x, axis=0)
    minima = jnp.min(x, axis=0)
    minima = jnp.where(maxima == minima, maxima - 1.0, minima)
    return (x - minima) / (maxima - minima)


if __name__ == "__main__":
    key = jax.random.PRNGKey(0)
    k1, k2, k3, k4 = jax.random.split(key, 4)

    # 1) Module-typical small shape: seq=8, features=256; one constant column
    #    (exercises the max == min guard). Single-pass, grid=(1,), lane-dense.
    T, F = 8, 256
    x = jax.random.normal(k1, (T, F), dtype=jnp.float32).at[:, 5].set(3.0)
    out = jax.block_until_ready(regression_normalized(x))
    ref = _reference(x)
    assert out.shape == x.shape and out.dtype == x.dtype
    assert jnp.allclose(out, ref, atol=1e-6, rtol=1e-6)
    assert jnp.allclose(out[:, 5], 1.0)

    # 2) Non-multiple-of-128 feature count: full-extent block, no pad/slice copy.
    x2 = jax.random.normal(k2, (16, 200), dtype=jnp.float32).at[:, 7].set(-2.0)
    out2 = jax.block_until_ready(regression_normalized(x2))
    assert out2.shape == x2.shape and out2.dtype == x2.dtype
    assert jnp.allclose(out2, _reference(x2), atol=1e-6, rtol=1e-6)
    assert jnp.allclose(out2[:, 7], 1.0)

    # 3) Two-pass (large-T) path, forced at a small shape with a ragged T tile.
    x3 = jax.random.normal(k3, (20, 384), dtype=jnp.float32).at[:, 0].set(0.5)
    out3 = jax.block_until_ready(
        regression_normalized(x3, two_pass=True, _max_tile_t=8))
    assert jnp.allclose(out3, _reference(x3), atol=1e-6, rtol=1e-6)
    assert jnp.allclose(out3[:, 0], 1.0)

    # 4) bf16 input: stats / normalization computed in f32 inside the kernel.
    x4 = jax.random.normal(k4, (8, 256), dtype=jnp.float32).astype(jnp.bfloat16)
    out4 = jax.block_until_ready(regression_normalized(x4))
    ref4 = _reference(x4.astype(jnp.float32))
    assert out4.dtype == jnp.bfloat16
    assert jnp.allclose(out4.astype(jnp.float32), ref4, atol=1e-2, rtol=1e-2)

    # 5) >2-D input glue (trailing dims flattened into the feature axis).
    x5 = jax.random.normal(k1, (8, 4, 32), dtype=jnp.float32)
    out5 = jax.block_until_ready(regression_normalized(x5))
    assert out5.shape == x5.shape
    assert jnp.allclose(out5, _reference(x5), atol=1e-6, rtol=1e-6)

    print("KERNEL_OK")
</pallas_src>

<mosaic_0001>
module attributes {stable_mosaic.version = 11 : i64} {
  func.func @_normalize_1pass_kernel(%arg0: i32, %arg1: memref<8x256xf32, #tpu.memory_space<vmem>>, %arg2: memref<8x256xf32, #tpu.memory_space<vmem>>) attributes {dimension_semantics = [#tpu.dimension_semantics<parallel>], iteration_bounds = array<i64: 1>, scalar_prefetch = 0 : i64, scratch_operands = 0 : i64, tpu.core_type = #tpu.core_type<tc>, window_params = [{transform_indices = @transform_0, window_bounds = array<i64: 8, 256>}, {transform_indices = @transform_1, window_bounds = array<i64: 8, 256>}]} {
    %c0 = arith.constant 0 : index
    %c0_0 = arith.constant 0 : index
    %0 = vector.load %arg1[%c0, %c0_0] : memref<8x256xf32, #tpu.memory_space<vmem>>, vector<8x256xf32>
    %cst = arith.constant dense<0xFF800000> : vector<256xf32>
    %1 = vector.multi_reduction <maximumf>, %0, %cst [0] : vector<8x256xf32> to vector<256xf32>
    %2 = vector.shape_cast %1 : vector<256xf32> to vector<1x256xf32>
    %cst_1 = arith.constant dense<0x7F800000> : vector<256xf32>
    %3 = vector.multi_reduction <minimumf>, %0, %cst_1 [0] : vector<8x256xf32> to vector<256xf32>
    %4 = vector.shape_cast %3 : vector<256xf32> to vector<1x256xf32>
    %5 = arith.cmpf oeq, %2, %4 : vector<1x256xf32>
    %cst_2 = arith.constant 1.000000e+00 : f32
    %6 = vector.broadcast %cst_2 : f32 to vector<1x256xf32>
    %7 = arith.subf %2, %6 : vector<1x256xf32>
    %8 = arith.select %5, %7, %4 : vector<1x256xi1>, vector<1x256xf32>
    %9 = arith.subf %2, %8 : vector<1x256xf32>
    %cst_3 = arith.constant 1.000000e+00 : f32
    %10 = vector.broadcast %cst_3 : f32 to vector<1x256xf32>
    %11 = arith.divf %10, %9 : vector<1x256xf32>
    %12 = vector.broadcast %8 : vector<1x256xf32> to vector<8x256xf32>
    %13 = arith.subf %0, %12 : vector<8x256xf32>
    %14 = vector.broadcast %11 : vector<1x256xf32> to vector<8x256xf32>
    %15 = arith.mulf %13, %14 : vector<8x256xf32>
    %c0_4 = arith.constant 0 : index
    %c0_5 = arith.constant 0 : index
    %16 = vector.load %arg2[%c0_4, %c0_5] : memref<8x256xf32, #tpu.memory_space<vmem>>, vector<8x256xf32>
    tpu.vector_store %arg2[%c0_4, %c0_5], %15 {strides = array<i32>} : memref<8x256xf32, #tpu.memory_space<vmem>>, vector<8x256xf32>,
    return
  }
  func.func @transform_0(%arg0: i32) -> (i32, i32) {
    %c0_i32 = arith.constant 0 : i32
    %c0_i32_0 = arith.constant 0 : i32
    return %c0_i32, %arg0 : i32, i32
  }
  func.func @transform_1(%arg0: i32) -> (i32, i32) {
    %c0_i32 = arith.constant 0 : i32
    %c0_i32_0 = arith.constant 0 : i32
    return %c0_i32, %arg0 : i32, i32
  }
}

</mosaic_0001>

<bundles_post_ra>
// kernel: tpu_custom_call.1
= control target key start
LH: loop header
LB: loop body
LE: loop exit
PB: predicated region body
PF: predicated region fallthrough
CT: control target
= control target key end

     0   :  { %6 = vsyncpa [#allocation3], 0  ;;  %s150_s0 = inlined_call_operand.hbm [shape: f32[8,256], index: 0, kind: input, shape index: {}]   ;;  %s151_s1 = inlined_call_operand.hbm [shape: f32[8,256], index: 1, kind: output, shape index: {}]  }
   0x1   :  { %7 = vsyncpa [#allocation4], 0  ;;  %s132_s6 = smov [#allocation2]  }
   0x2   :  { %s14_s7 = sshll.u32 %s132_s6, 4  ;;  %s15_s7 = int_to_ptr.vmem [resolvable:$true] %s14_s7 }
   0x3   :  { %s96_s8 = scalar_lea.vmem %s15_s7, 256  ;;  %p101_p1 = scmp.lt.s32.totalorder %s15_s7, %s15_s7 }
   0x4   :  { %p97_p0 = scmp.ne.s32.totalorder %s15_s7, %s96_s8  ;;  %p102_p2 = scmp.lt.s32.totalorder %s96_s8, %s96_s8 }
   0x6   :  { %p103_p3 = por %p102_p2, %p101_p1 }
   0x8   :  { %p104_p4 = pnand %p103_p3, %p97_p0 }
   0xa   :  { %107 = shalt.err (!%p104_p4)
}
   0xb   :  { %17 = dma.hbm_to_vmem [thread:$0]  %s150_s0, 256, %s15_s7, [#allocation3]  }
   0xc   :  { %128 = dma.done.wait [#allocation3], 256  }
   0xd   :  { %129 = vsyncadd [#allocation3], 4294967040  ;;  %v21_v0 = vld [vmem:[#allocation2] sm:$0xff]  ;;  %v22_v1 = vld [vmem:[#allocation2 + $0x8] sm:$0xff]  ;;  %s133_s0 = smov [#allocation5]  }
   0xe   :  { %v23_v2 = vrot.slane %v21_v0, 4  ;;  %v29_v3 = vrot.slane %v22_v1, 4  ;;  %s71_s11 = sshll.u32 %s133_s0, 4  ;;  %s72_s11 = int_to_ptr.vmem [resolvable:$true] %s71_s11 }
   0xf   :  { %s108_s12 = scalar_lea.vmem %s72_s11, 256  ;;  %p113_p6 = scmp.lt.s32.totalorder %s72_s11, %s72_s11 }
  0x10   :  { %v24_v4 = vmax.f32 %v21_v0, %v23_v2  ;;  %v36_v5 = vmin.f32 %v21_v0, %v23_v2  ;;  %v30_v6 = vmax.f32 %v22_v1, %v29_v3  ;;  %v42_v7 = vmin.f32 %v22_v1, %v29_v3  ;;  %p109_p5 = scmp.ne.s32.totalorder %s72_s11, %s108_s12  ;;  %p114_p7 = scmp.lt.s32.totalorder %s108_s12, %s108_s12 }
  0x12   :  { %v25_v8 = vrot.slane %v24_v4, 2  ;;  %v37_v9 = vrot.slane %v36_v5, 2  ;;  %v31_v10 = vrot.slane %v30_v6, 2  ;;  %v43_v11 = vrot.slane %v42_v7, 2  ;;  %p115_p8 = por %p114_p7, %p113_p6 }
  0x14   :  { %v26_v12 = vmax.f32 %v24_v4, %v25_v8  ;;  %v38_v13 = vmin.f32 %v36_v5, %v37_v9  ;;  %v32_v14 = vmax.f32 %v30_v6, %v31_v10  ;;  %v44_v15 = vmin.f32 %v42_v7, %v43_v11  ;;  %p116_p9 = pnand %p115_p8, %p109_p5 }
  0x16   :  { %v27_v16 = vrot.slane %v26_v12, 1  ;;  %v39_v17 = vrot.slane %v38_v13, 1  ;;  %v33_v18 = vrot.slane %v32_v14, 1  ;;  %v45_v19 = vrot.slane %v44_v15, 1 }
  0x18   :  { %v28_v20 = vmax.f32 %v26_v12, %v27_v16  ;;  %v40_v21 = vmin.f32 %v38_v13, %v39_v17  ;;  %v34_v22 = vmax.f32 %v32_v14, %v33_v18  ;;  %v46_v23 = vmin.f32 %v44_v15, %v45_v19 }
  0x1a   :  { %vm47_vm0 = vcmp.eq.f32.partialorder %v28_v20, %v40_v21  ;;  %v80_v24 = vadd.f32 -1.0, %v28_v20  ;;  %vm48_vm1 = vcmp.eq.f32.partialorder %v34_v22, %v46_v23  ;;  %v81_v25 = vadd.f32 -1.0, %v34_v22 }
  0x1c   :  { %v51_v26 = vsel %vm47_vm0, %v80_v24, %v40_v21  ;;  %v52_v27 = vsel %vm48_vm1, %v81_v25, %v46_v23 }
  0x1d   :  { %v53_v28 = vsub.f32 %v28_v20, %v51_v26  ;;  %v54_v29 = vsub.f32 %v34_v22, %v52_v27  ;;  %v59_v30 = vsub.f32 %v21_v0, %v51_v26  ;;  %v60_v31 = vsub.f32 %v22_v1, %v52_v27 }
  0x1f   :  { %84 = vrcp.f32 %v53_v28 }
  0x20   :  { %86 = vrcp.f32 %v54_v29 }
  0x2c   :  { %v85_v32 = vpop.eup %84 }
  0x2d   :  { %v87_v33 = vpop.eup %86  ;;  %v61_v34 = vmul.f32 %v85_v32, %v59_v30 }
  0x2e   :  { %v62_v35 = vmul.f32 %v87_v33, %v60_v31 }
  0x2f   :  { %63 = vst [vmem:[#allocation5] sm:$0xff] %v61_v34 }
  0x30   :  { %64 = vst [vmem:[#allocation5 + $0x8] sm:$0xff] %v62_v35 }
  0x31   :  { %119 = shalt.err (!%p116_p9)
}
  0x32   :  { %74 = dma.vmem_to_hbm [thread:$0]  %s72_s11, 256, %s151_s1, [#allocation4]  }
  0x33   :  { %130 = dma.done.wait [#allocation4], 256  }
  0x34   :  { %131 = vsyncadd [#allocation4], 4294967040 }
  0x35   :  { %78 = vsyncpa [#allocation3], 1 }
  0x36   :  { %79 = vsyncpa [#allocation4], 1 }

</bundles_post_ra>
